<compile_context>
chip_gen: v7x
topology: tpu7x:2x2x1
jax: 0.10.0
libtpu: 0.0.40
codegen_flags: <defaults>
</compile_context>

<pallas_src>
import functools

import jax
import jax.numpy as jnp
import numpy as np
from jax import lax
from jax.experimental import pallas as pl
from jax.experimental.pallas import tpu as pltpu

# ----------------------------- config (static) ------------------------------
CHANNELS = 4
KERNEL_SIZE = 3
STRIDE = 2
DILATION = 1
EPS = 1e-5                  # GroupNorm default eps

BATCH = 2
T_IN = 16

LANE = 128                  # TPU lane width
ROW_TILE = 8                # f32 sublanes; raise to 128/256 when batching many problems

# TODO(synk): transposed=True (ConvTranspose1d) branch of BlockSimple is not
# implemented here; only the standard Conv1d branch is translated.


def conv1d_out_len(t_in, k, stride, dilation):
    return (t_in - dilation * (k - 1) - 1) // stride + 1


def _round_up(x, m):
    return ((x + m - 1) // m) * m


# ------------------------ wrapper-side constant folding ----------------------
def _build_constants(w, gamma, beta, t_in, stride, dilation):
    """Fold conv weights/stride/dilation, the GroupNorm mean subtraction and
    the nearest-resample residual into one lane-padded constant slab, plus a
    padded segment-mean matrix for the variance and pre-tiled gamma/beta."""
    w_np = np.asarray(w, np.float32)
    c_out, c_in, k = w_np.shape
    c = c_in
    t_out = conv1d_out_len(t_in, k, stride, dilation)
    ct = c * t_out
    ct_pad = _round_up(ct, LANE)

    # Conv tap-placement matrices P_k[t_in, t_out].
    p = np.zeros((k, t_in, t_out), np.float32)
    for kk in range(k):
        for t in range(t_out):
            p[kk, t * stride + kk * dilation, t] = 1.0

    # Dense conv fold: M[(i, ti), (o, to)] = sum_k w[o, i, kk] * P_k[ti, to].
    # NOTE: at non-toy sizes do NOT materialize the dense time axis (only K
    # taps per output column are nonzero) -- switch to a K-tap tiled conv.
    m = np.zeros((c * t_in, ct), np.float32)
    for kk in range(k):
        m += np.kron(w_np[:, :, kk].T, p[kk])

    # Per-channel mean-over-time segment matrix.
    seg = np.kron(np.eye(c, dtype=np.float32),
                  np.full((t_out, t_out), 1.0 / t_out, np.float32))

    # Fold the GroupNorm mean subtraction:  x @ mc == conv(x) - mean_t(conv(x)).
    mc = m - m @ seg

    # Nearest-resample residual gather (src = (t * T_in) // T_out).
    pr = np.zeros((t_in, t_out), np.float32)
    for t in range(t_out):
        pr[(t * t_in) // t_out, t] = 1.0
    r = np.kron(np.eye(c, dtype=np.float32), pr)

    # One lane-padded slab [mc | r]; each half padded to ct_pad columns so the
    # post-dot slices land exactly on 128-lane vreg boundaries (free).
    slab = np.zeros((c * t_in, 2 * ct_pad), np.float32)
    slab[:, :ct] = mc
    slab[:, ct_pad:ct_pad + ct] = r

    # Padded segment matrix for the variance reduction (pad rows/cols are 0).
    seg_pad = np.zeros((ct_pad, ct_pad), np.float32)
    seg_pad[:ct, :ct] = seg

    # gamma/beta pre-tiled over T_out to the padded width; pad lanes are 0 so
    # padded columns stay exactly 0 through rsqrt / ReLU / residual.
    affine = np.zeros((2, ct_pad), np.float32)
    affine[0, :ct] = np.repeat(np.asarray(gamma, np.float32).reshape(c), t_out)
    affine[1, :ct] = np.repeat(np.asarray(beta, np.float32).reshape(c), t_out)

    # Guard the dense-fold strategy against VMEM (v7x: 64 MiB, double-buffered).
    dense_bytes = slab.size * 4 + seg_pad.size * 4
    assert dense_bytes < 8 * 1024 * 1024, (
        "folded-constant path too large for VMEM; use a K-tap tiled conv")

    return (jnp.asarray(slab), jnp.asarray(seg_pad), jnp.asarray(affine),
            t_out, ct, ct_pad)


# --------------------------------- kernel -----------------------------------
def block_simple_kernel(x_ref, slab_ref, seg_ref, affine_ref, out_ref, *,
                        ct_pad, eps):
    x = x_ref[...]                                        # (ROW_TILE, C*T_in)

    # ONE MXU pass for both the mean-centered conv and the nearest residual.
    both = jnp.dot(x, slab_ref[...], preferred_element_type=jnp.float32)
    centered = both[:, :ct_pad]        # conv(x) - mean_t(conv(x)), 128-aligned
    res = both[:, ct_pad:]             # nearest-resampled residual

    # Per-(b, c) variance over time via one small segment-mean matmul.
    var = jnp.dot(centered * centered, seg_ref[...],
                  preferred_element_type=jnp.float32)

    # Fused GN affine: y = centered * (gamma * rsqrt(var+eps)) + beta.
    gamma = affine_ref[0]                                 # (ct_pad,)
    beta = affine_ref[1]                                  # (ct_pad,)
    scale = gamma * lax.rsqrt(var + eps)
    y = centered * scale + beta

    # ReLU + temporal residual; lane-dense unmasked store.
    out_ref[...] = jnp.maximum(y, 0.0) + res


# -------------------------------- wrapper ------------------------------------
def block_simple(x, w, gamma, beta, *, stride, dilation):
    b, c, t_in = x.shape
    slab, seg, affine, t_out, ct, ct_pad = _build_constants(
        w, gamma, beta, t_in, stride, dilation)

    # Lane-flatten (B, C, T) -> (B, C*T_in) and pad rows to a full sublane tile.
    b_pad = _round_up(max(b, ROW_TILE), ROW_TILE)
    x_flat = jnp.zeros((b_pad, c * t_in), jnp.float32)
    x_flat = x_flat.at[:b].set(x.reshape(b, c * t_in).astype(jnp.float32))

    kernel = functools.partial(block_simple_kernel, ct_pad=ct_pad, eps=EPS)

    out_flat = pl.pallas_call(
        kernel,
        out_shape=jax.ShapeDtypeStruct((b_pad, ct_pad), jnp.float32),
        grid=(b_pad // ROW_TILE,),
        in_specs=[
            pl.BlockSpec((ROW_TILE, c * t_in), lambda i: (i, 0)),
            pl.BlockSpec((c * t_in, 2 * ct_pad), lambda i: (0, 0)),
            pl.BlockSpec((ct_pad, ct_pad), lambda i: (0, 0)),
            pl.BlockSpec((2, ct_pad), lambda i: (0, 0)),
        ],
        out_specs=pl.BlockSpec((ROW_TILE, ct_pad), lambda i: (i, 0)),
        compiler_params=pltpu.CompilerParams(
            dimension_semantics=("parallel",)),
    )(x_flat, slab, seg, affine)

    return out_flat[:b, :ct].reshape(b, c, t_out)


# ----------------------------- pure-JAX reference ----------------------------
def block_simple_ref(x, w, gamma, beta, *, stride, dilation):
    b, c, t_in = x.shape
    k_size = w.shape[-1]
    t_out = conv1d_out_len(t_in, k_size, stride, dilation)

    y = lax.conv_general_dilated(
        x, w, window_strides=(stride,), padding='VALID',
        rhs_dilation=(dilation,),
        dimension_numbers=('NCH', 'OIH', 'NCH'))
    mean = jnp.mean(y, axis=-1, keepdims=True)
    var = jnp.mean((y - mean) ** 2, axis=-1, keepdims=True)
    y = (y - mean) * lax.rsqrt(var + EPS)
    y = y * gamma.reshape(1, c, 1) + beta.reshape(1, c, 1)
    y = jnp.maximum(y, 0.0)

    if t_out == t_in:
        x_res = x
    else:
        idx = (np.arange(t_out) * t_in) // t_out
        x_res = x[:, :, idx]
    return y + x_res


# ----------------------------------- main ------------------------------------
if __name__ == "__main__":
    key = jax.random.PRNGKey(0)
    kx, kw, kg, kb = jax.random.split(key, 4)

    x = jax.random.normal(kx, (BATCH, CHANNELS, T_IN), dtype=jnp.float32)

    # Conv1d weight (out_ch, in_ch, K), deterministic uniform init.
    bound = 1.0 / np.sqrt(CHANNELS * KERNEL_SIZE)
    w = jax.random.uniform(kw, (CHANNELS, CHANNELS, KERNEL_SIZE),
                           minval=-bound, maxval=bound, dtype=jnp.float32)
    # GroupNorm affine params (non-trivial values to exercise the fused affine).
    gamma = 1.0 + 0.1 * jax.random.normal(kg, (CHANNELS,), dtype=jnp.float32)
    beta = 0.1 * jax.random.normal(kb, (CHANNELS,), dtype=jnp.float32)

    out = block_simple(x, w, gamma, beta, stride=STRIDE, dilation=DILATION)
    out = jax.block_until_ready(out)

    ref = block_simple_ref(x, w, gamma, beta, stride=STRIDE, dilation=DILATION)
    np.testing.assert_allclose(np.asarray(out), np.asarray(ref),
                               rtol=2e-3, atol=2e-3)

    print("KERNEL_OK")
</pallas_src>

<mosaic_0001>
module attributes {stable_mosaic.version = 11 : i64} {
  func.func @block_simple_kernel(%arg0: i32, %arg1: memref<8x64xf32, #tpu.memory_space<vmem>>, %arg2: memref<64x256xf32, #tpu.memory_space<vmem>>, %arg3: memref<128x128xf32, #tpu.memory_space<vmem>>, %arg4: memref<2x128xf32, #tpu.memory_space<vmem>>, %arg5: memref<8x128xf32, #tpu.memory_space<vmem>>) attributes {dimension_semantics = [#tpu.dimension_semantics<parallel>], iteration_bounds = array<i64: 1>, scalar_prefetch = 0 : i64, scratch_operands = 0 : i64, tpu.core_type = #tpu.core_type<tc>, window_params = [{transform_indices = @transform_0, window_bounds = array<i64: 8, 64>}, {pipeline_mode = #tpu.pipeline_mode<synchronous>, transform_indices = @transform_1, window_bounds = array<i64: 64, 256>}, {pipeline_mode = #tpu.pipeline_mode<synchronous>, transform_indices = @transform_2, window_bounds = array<i64: 128, 128>}, {pipeline_mode = #tpu.pipeline_mode<synchronous>, transform_indices = @transform_3, window_bounds = array<i64: 2, 128>}, {transform_indices = @transform_4, window_bounds = array<i64: 8, 128>}]} {
    %c0 = arith.constant 0 : index
    %c0_0 = arith.constant 0 : index
    %0 = vector.load %arg1[%c0, %c0_0] : memref<8x64xf32, #tpu.memory_space<vmem>>, vector<8x64xf32>
    %c0_1 = arith.constant 0 : index
    %c0_2 = arith.constant 0 : index
    %1 = vector.load %arg2[%c0_1, %c0_2] : memref<64x256xf32, #tpu.memory_space<vmem>>, vector<64x256xf32>
    %cst = arith.constant dense<0.000000e+00> : vector<8x256xf32>
    %2 = tpu.matmul %0, %1, %cst {dimension_numbers = #tpu.dot_dimension_numbers<[1], [0], [0], [1], [0, 0, 1, 1], [], []>} : vector<8x64xf32>, vector<64x256xf32>, vector<8x256xf32> -> vector<8x256xf32>
    %3 = vector.extract_strided_slice %2 {offsets = [0, 0], sizes = [8, 128], strides = [1, 1]} : vector<8x256xf32> to vector<8x128xf32>
    %4 = vector.extract_strided_slice %2 {offsets = [0, 128], sizes = [8, 128], strides = [1, 1]} : vector<8x256xf32> to vector<8x128xf32>
    %5 = arith.mulf %3, %3 : vector<8x128xf32>
    %c0_3 = arith.constant 0 : index
    %c0_4 = arith.constant 0 : index
    %6 = vector.load %arg3[%c0_3, %c0_4] : memref<128x128xf32, #tpu.memory_space<vmem>>, vector<128x128xf32>
    %cst_5 = arith.constant dense<0.000000e+00> : vector<8x128xf32>
    %7 = tpu.matmul %5, %6, %cst_5 {dimension_numbers = #tpu.dot_dimension_numbers<[1], [0], [0], [1], [0, 0, 1, 1], [], []>} : vector<8x128xf32>, vector<128x128xf32>, vector<8x128xf32> -> vector<8x128xf32>
    %c0_6 = arith.constant 0 : index
    %c0_7 = arith.constant 0 : index
    %8 = vector.load %arg4[%c0_6, %c0_7] : memref<2x128xf32, #tpu.memory_space<vmem>>, vector<1x128xf32>
    %9 = vector.shape_cast %8 : vector<1x128xf32> to vector<128xf32>
    %c1 = arith.constant 1 : index
    %c0_8 = arith.constant 0 : index
    %10 = vector.load %arg4[%c1, %c0_8] : memref<2x128xf32, #tpu.memory_space<vmem>>, vector<1x128xf32>
    %11 = vector.shape_cast %10 : vector<1x128xf32> to vector<128xf32>
    %cst_9 = arith.constant 9.99999974E-6 : f32
    %12 = vector.broadcast %cst_9 : f32 to vector<8x128xf32>
    %13 = arith.addf %7, %12 : vector<8x128xf32>
    %14 = math.rsqrt %13 : vector<8x128xf32>
    %15 = vector.shape_cast %9 : vector<128xf32> to vector<1x128xf32>
    %16 = vector.broadcast %15 : vector<1x128xf32> to vector<8x128xf32>
    %17 = arith.mulf %16, %14 : vector<8x128xf32>
    %18 = arith.mulf %3, %17 : vector<8x128xf32>
    %19 = vector.shape_cast %11 : vector<128xf32> to vector<1x128xf32>
    %20 = vector.broadcast %19 : vector<1x128xf32> to vector<8x128xf32>
    %21 = arith.addf %18, %20 : vector<8x128xf32>
    %cst_10 = arith.constant 0.000000e+00 : f32
    %22 = vector.broadcast %cst_10 : f32 to vector<8x128xf32>
    %23 = arith.maximumf %21, %22 : vector<8x128xf32>
    %24 = arith.addf %23, %4 : vector<8x128xf32>
    %c0_11 = arith.constant 0 : index
    %c0_12 = arith.constant 0 : index
    %25 = vector.load %arg5[%c0_11, %c0_12] : memref<8x128xf32, #tpu.memory_space<vmem>>, vector<8x128xf32>
    tpu.vector_store %arg5[%c0_11, %c0_12], %24 {strides = array<i32>} : memref<8x128xf32, #tpu.memory_space<vmem>>, vector<8x128xf32>,
    return
  }
  func.func @transform_0(%arg0: i32) -> (i32, i32) {
    %c0_i32 = arith.constant 0 : i32
    %c0_i32_0 = arith.constant 0 : i32
    return %arg0, %c0_i32 : i32, i32
  }
  func.func @transform_1(%arg0: i32) -> (i32, i32) {
    %c0_i32 = arith.constant 0 : i32
    %c0_i32_0 = arith.constant 0 : i32
    %c0_i32_1 = arith.constant 0 : i32
    return %c0_i32, %c0_i32_0 : i32, i32
  }
  func.func @transform_2(%arg0: i32) -> (i32, i32) {
    %c0_i32 = arith.constant 0 : i32
    %c0_i32_0 = arith.constant 0 : i32
    %c0_i32_1 = arith.constant 0 : i32
    return %c0_i32, %c0_i32_0 : i32, i32
  }
  func.func @transform_3(%arg0: i32) -> (i32, i32) {
    %c0_i32 = arith.constant 0 : i32
    %c0_i32_0 = arith.constant 0 : i32
    %c0_i32_1 = arith.constant 0 : i32
    return %c0_i32, %c0_i32_0 : i32, i32
  }
  func.func @transform_4(%arg0: i32) -> (i32, i32) {
    %c0_i32 = arith.constant 0 : i32
    %c0_i32_0 = arith.constant 0 : i32
    return %arg0, %c0_i32 : i32, i32
  }
}

</mosaic_0001>

<bundles_post_ra>
// kernel: tpu_custom_call.1
= control target key start
LH: loop header
LB: loop body
LE: loop exit
PB: predicated region body
PF: predicated region fallthrough
CT: control target
= control target key end

     0   :  { %9 = vsyncpa [#allocation3], 0  ;;  %s571_s0 = inlined_call_operand.hbm [shape: f32[8,64], index: 0, kind: input, shape index: {}]   ;;  %s572_s1 = inlined_call_operand.hbm [shape: f32[64,256], index: 1, kind: input, shape index: {}]   ;;  %s573_s2 = inlined_call_operand.hbm [shape: f32[128,128], index: 2, kind: input, shape index: {}]   ;;  %s574_s3 = inlined_call_operand.vmem [shape: f32[2,128], index: 3, kind: input, shape index: {}]   ;;  %s575_s4 = inlined_call_operand.hbm [shape: f32[8,128], index: 4, kind: output, shape index: {}]  }
   0x1   :  { %10 = vsyncpa [#allocation6], 0 }
   0x2   :  { %11 = vsyncpa [#allocation4], 0  ;;  %s471_s15 = smov [#allocation5]   ;;  %s377_s19 = scalar_lea.hbm %s572_s1, 2048 }
   0x3   :  { %s27_s16 = sshll.u32 %s471_s15, 4  ;;  %p378_p0 = scmp.ne.s32.totalorder %s572_s1, %s377_s19  ;;  %s28_s16 = int_to_ptr.vmem [resolvable:$true] %s27_s16 }
   0x4   :  { %p381_p1 = scmp.lt.u32.totalorder %s377_s19, %s572_s1 }
   0x6   :  { %p383_p2 = pnand %p381_p1, %p378_p0 }
   0x8   :  { %386 = shalt.err (!%p383_p2)
}
   0x9   :  { %s387_s24 = scalar_lea.vmem %s28_s16, 2048  ;;  %p392_p4 = scmp.lt.s32.totalorder %s28_s16, %s28_s16 }
   0xa   :  { %p388_p3 = scmp.ne.s32.totalorder %s28_s16, %s387_s24  ;;  %p393_p5 = scmp.lt.s32.totalorder %s387_s24, %s387_s24 }
   0xc   :  { %p394_p6 = por %p393_p5, %p392_p4 }
   0xe   :  { %p395_p7 = pnand %p394_p6, %p388_p3 }
  0x10   :  { %398 = shalt.err (!%p395_p7)
}
  0x11   :  { %s472_s25 = smov 256   ;;  %s473_s26 = smov 16  }
  0x12   :  { %33 = dma.hbm_to_vmem [thread:$0]  %s572_s1, 2048, %s28_s16, [#allocation6], %s472_s25, %s472_s25, %s473_s26  }
  0x13   :  { %s474_s29 = smov [#allocation2]   ;;  %s475_s5 = smov [#allocation7]  }
  0x14   :  { %s18_s30 = sshll.u32 %s474_s29, 4  ;;  %s39_s6 = sshll.u32 %s475_s5, 4  ;;  %s19_s30 = int_to_ptr.vmem [resolvable:$true] %s18_s30  ;;  %s40_s6 = int_to_ptr.vmem [resolvable:$true] %s39_s6 }
  0x15   :  { %s399_s9 = scalar_lea.hbm %s571_s0, 128 }
  0x16   :  { %p400_p8 = scmp.ne.s32.totalorder %s571_s0, %s399_s9  ;;  %p403_p9 = scmp.lt.u32.totalorder %s399_s9, %s571_s0 }
  0x18   :  { %p405_p10 = pnand %p403_p9, %p400_p8 }
  0x1a   :  { %408 = shalt.err (!%p405_p10)
}
  0x1b   :  { %s409_s1 = scalar_lea.vmem %s19_s30, 128  ;;  %p414_p12 = scmp.lt.s32.totalorder %s19_s30, %s19_s30 }
  0x1c   :  { %p410_p11 = scmp.ne.s32.totalorder %s19_s30, %s409_s1  ;;  %p415_p13 = scmp.lt.s32.totalorder %s409_s1, %s409_s1 }
  0x1e   :  { %p416_p0 = por %p415_p13, %p414_p12 }
  0x20   :  { %p417_p1 = pnand %p416_p0, %p410_p11 }
  0x22   :  { %420 = shalt.err (!%p417_p1)
}
  0x23   :  { %21 = dma.hbm_to_vmem [thread:$0]  %s571_s0, 128, %s19_s30, [#allocation3]  }
  0x24   :  { %s421_s18 = scalar_lea.hbm %s573_s2, 2048 }
  0x25   :  { %p422_p2 = scmp.ne.s32.totalorder %s573_s2, %s421_s18  ;;  %p425_p3 = scmp.lt.u32.totalorder %s421_s18, %s573_s2 }
  0x27   :  { %p427_p4 = pnand %p425_p3, %p422_p2 }
  0x29   :  { %430 = shalt.err (!%p427_p4)
}
  0x2a   :  { %s431_s23 = scalar_lea.vmem %s40_s6, 2048  ;;  %p436_p6 = scmp.lt.s32.totalorder %s40_s6, %s40_s6 }
  0x2b   :  { %p432_p5 = scmp.ne.s32.totalorder %s40_s6, %s431_s23  ;;  %p437_p7 = scmp.lt.s32.totalorder %s431_s23, %s431_s23 }
  0x2d   :  { %p438_p8 = por %p437_p7, %p436_p6 }
  0x2f   :  { %p439_p9 = pnand %p438_p8, %p432_p5 }
  0x31   :  { %442 = shalt.err (!%p439_p9)
}
  0x32   :  { %s476_s0 = smov 128   ;;  %s477_s24 = smov 8  }
  0x33   :  { %45 = dma.hbm_to_vmem [thread:$0]  %s573_s2, 2048, %s40_s6, [#allocation6], %s476_s0, %s476_s0, %s477_s24  }
  0x34   :  { %465 = dma.done.wait [#allocation3], 128  }
  0x35   :  { %466 = vsyncadd [#allocation3], 4294967168 }
  0x36   :  { %467 = dma.done.wait [#allocation6], 4096  }
  0x37   :  { %468 = vsyncadd [#allocation6], 4294963200  ;;  %v478_v0 = vmov 0.0   ;;  %v479_v1 = vmov 0.0|0.0   ;;  %v59_v2 = vld [vmem:[#allocation5 + $0x8] sm:$0xff]  ;;  %v61_v3 = vld [vmem:[#allocation5 + $0x18] sm:$0xff] }
  0x38   :  { %142 = vmatprep.mubr.f32.mxu0 %v478_v0  ;;  %340 = vmatprep.subr.bf16.mxu1 %v479_v1  ;;  %v58_v4 = vld [vmem:[#allocation5] sm:$0xff]  ;;  %v324_v5 = vpack.c.bf16 %v61_v3, %v59_v2  ;;  %v60_v6 = vld [vmem:[#allocation5 + $0x10] sm:$0xff]  ;;  %v63_v7 = vld [vmem:[#allocation5 + $0x28] sm:$0xff]  ;;  %vm74_vm0 = vcmask 523264   ;;  %vm480_vm1 = vmmov 0   ;;  %s481_s30 = smov [#allocation8]  }
  0x39   :  { %v65_v8 = vld [vmem:[#allocation5 + $0x38] sm:$0xff]  ;;  %v326_v9 = vpack.c.bf16 %v60_v6, %v58_v4  ;;  %v62_v11 = vld [vmem:[#allocation5 + $0x20] sm:$0xff]  ;;  %v64_v12 = vld [vmem:[#allocation5 + $0x30] sm:$0xff]  ;;  %321 = vmatprep.mubr.msk.f32.mxu1 %vm480_vm1, %v478_v0  ;;  %s259_s5 = sshll.u32 %s481_s30, 4  ;;  %s260_s5 = int_to_ptr.vmem [resolvable:$true] %s259_s5 }
  0x3a   :  { %v328_v10 = vpack.c.bf16 %v65_v8, %v63_v7  ;;  %v67_v13 = vld [vmem:[#allocation5 + $0x48] sm:$0xff]  ;;  %325 = vmatprep.subr.bf16.mxu0 %v324_v5  ;;  %v69_v14 = vld [vmem:[#allocation5 + $0x58] sm:$0xff]  ;;  %v330_v15 = vpack.c.bf16 %v64_v12, %v62_v11  ;;  %v66_v16 = vld [vmem:[#allocation5 + $0x40] sm:$0xff]  ;;  %s443_s6 = scalar_lea.vmem %s260_s5, 128  ;;  %p448_p11 = scmp.lt.s32.totalorder %s260_s5, %s260_s5 }
  0x3b   :  { %327 = vmatpush1.bf16.msra.mxu0 %v326_v9  ;;  %v68_v17 = vld [vmem:[#allocation5 + $0x50] sm:$0xff]  ;;  %v332_v18 = vpack.c.bf16 %v69_v14, %v67_v13  ;;  %v71_v19 = vld [vmem:[#allocation5 + $0x68] sm:$0xff]  ;;  %v73_v20 = vld [vmem:[#allocation5 + $0x78] sm:$0xff]  ;;  %p444_p10 = scmp.ne.s32.totalorder %s260_s5, %s443_s6  ;;  %p449_p12 = scmp.lt.s32.totalorder %s443_s6, %s443_s6 }
  0x3c   :  { %329 = vmatprep.subr.bf16.mxu0 %v328_v10  ;;  %v150_v21 = vld [vmem:[#allocation7] sm:$0xff]  ;;  %v151_v22 = vld [vmem:[#allocation7 + $0x8] sm:$0xff]  ;;  %v152_v23 = vld [vmem:[#allocation7 + $0x10] sm:$0xff]  ;;  %v334_v26 = vpack.c.bf16 %v68_v17, %v66_v16  ;;  %v336_v27 = vpack.c.bf16 %v73_v20, %v71_v19 }
  0x3d   :  { %v153_v24 = vld [vmem:[#allocation7 + $0x18] sm:$0xff]  ;;  %v341_v25 = vpack.c.bf16 %v151_v22, %v150_v21  ;;  %v70_v28 = vld [vmem:[#allocation5 + $0x60] sm:$0xff]  ;;  %v72_v29 = vld [vmem:[#allocation5 + $0x70] sm:$0xff]  ;;  %p450_p13 = por %p449_p12, %p448_p11 }
  0x3e   :  { %v344_v30 = vpack.c.bf16 %v153_v24, %v152_v23  ;;  %v154_v31 = vld [vmem:[#allocation7 + $0x20] sm:$0xff]  ;;  %v155_v32 = vld [vmem:[#allocation7 + $0x28] sm:$0xff]  ;;  %v338_v33 = vpack.c.bf16 %v72_v29, %v70_v28  ;;  %v156_v35 = vld [vmem:[#allocation7 + $0x30] sm:$0xff] }
  0x3f   :  { %331 = vmatpush1.bf16.msra.mxu0 %v330_v15  ;;  %342 = vmatpush3.bf16.msra.mxu1 %v341_v25  ;;  %v347_v34 = vpack.c.bf16 %v155_v32, %v154_v31  ;;  %v157_v36 = vld [vmem:[#allocation7 + $0x38] sm:$0xff]  ;;  %v158_v39 = vld [vmem:[#allocation7 + $0x40] sm:$0xff]  ;;  %v159_v40 = vld [vmem:[#allocation7 + $0x48] sm:$0xff]  ;;  %p451_p0 = pnand %p450_p13, %p444_p10 }
  0x40   :  { %333 = vmatprep.subr.bf16.mxu0 %v332_v18  ;;  %343 = vmatprep.subr.bf16.mxu1 %v479_v1  ;;  %v57_v37 = vld [vmem:[#allocation2] sm:$0xff]  ;;  %v350_v38 = vpack.c.bf16 %v157_v36, %v156_v35  ;;  %v353_v41 = vpack.c.bf16 %v159_v40, %v158_v39  ;;  %v160_v42 = vld [vmem:[#allocation7 + $0x50] sm:$0xff]  ;;  %v162_v45 = vld [vmem:[#allocation7 + $0x60] sm:$0xff] }
  0x41   :  { %v161_v43 = vld [vmem:[#allocation7 + $0x58] sm:$0xff]  ;;  %v163_v46 = vld [vmem:[#allocation7 + $0x68] sm:$0xff]  ;;  %v164_v48 = vld [vmem:[#allocation7 + $0x70] sm:$0xff] }
  0x42   :  { %v356_v44 = vpack.c.bf16 %v161_v43, %v160_v42  ;;  %v359_v47 = vpack.c.bf16 %v163_v46, %v162_v45  ;;  %v165_v49 = vld [vmem:[#allocation7 + $0x78] sm:$0xff] }
  0x43   :  { %335 = vmatpush1.bf16.msra.mxu0 %v334_v26  ;;  %345 = vmatpush3.bf16.msra.mxu1 %v344_v30  ;;  %v362_v50 = vpack.c.bf16 %v165_v49, %v164_v48  ;;  %v270_v57 = vld [vmem:[%s574_s3] ss:$0 sm:$0xff]  ;;  %v271_v60 = vld [vmem:[%s574_s3 + $0x1] ss:$0 sm:$0xff] }
  0x44   :  { %337 = vmatprep.subr.bf16.mxu0 %v336_v27  ;;  %346 = vmatprep.subr.bf16.mxu1 %v479_v1 }
  0x47   :  { %339 = vmatpush1.bf16.msra.mxu0 %v338_v33  ;;  %348 = vmatpush3.bf16.msra.mxu1 %v347_v34 }
  0x48   :  { %349 = vmatprep.subr.bf16.mxu1 %v479_v1 }
  0x4a   :  { %269 = vmatmul.mubr.msk.f32.vlgmr.msra.gmra.mrb[0].mxu0 %vm74_vm0, %v57_v37 }
  0x4b   :  { %351 = vmatpush3.bf16.msra.mxu1 %v350_v38 }
  0x4c   :  { %352 = vmatprep.subr.bf16.mxu1 %v479_v1 }
  0x4f   :  { %354 = vmatpush3.bf16.msra.mxu1 %v353_v41 }
  0x50   :  { %355 = vmatprep.subr.bf16.mxu1 %v479_v1 }
  0x53   :  { %357 = vmatpush3.bf16.msra.mxu1 %v356_v44 }
  0x54   :  { %358 = vmatprep.subr.bf16.mxu1 %v479_v1 }
  0x57   :  { %360 = vmatpush3.bf16.msra.mxu1 %v359_v47 }
  0x58   :  { %361 = vmatprep.subr.bf16.mxu1 %v479_v1 }
  0x5b   :  { %363 = vmatpush3.bf16.msra.mxu1 %v362_v50 }
 0x11d   :  { %v144_v51 = vpop.f32.mrb[0].mxu0 }
 0x11e   :  { %v149_v52 = vmul.f32 %v144_v51, %v144_v51  ;;  %v146_v53 = vpop.f32.mrb[1].mxu0 }
 0x120   :  { %322 = vmatmul.mubr.f32.vlgmr.msra.gmra.mrb[0].mxu1 %v149_v52 }
 0x1f3   :  { %v234_v54 = vpop.f32.mrb[0].mxu1 }
 0x1f4   :  { %v235_v55 = vadd.f32 1e-05, %v234_v54  ;;  %v323_v56 = vpop.f32.mrb[1].mxu1 }
 0x1f6   :  { %375 = vrsqrt.f32 %v235_v55 }
 0x200   :  { %v376_v58 = vpop.eup %375 }
 0x201   :  { %v243_v59 = vmul.f32 %v376_v58, %v270_v57 }
 0x203   :  { %v244_v61 = vmul.f32 %v243_v59, %v144_v51 }
 0x205   :  { %v249_v62 = vadd.f32 %v271_v60, %v244_v61 }
 0x207   :  { %v250_v63 = vmax.f32 %v249_v62, 0.0 }
 0x209   :  { %v251_v0 = vadd.f32 %v250_v63, %v146_v53 }
 0x20b   :  { %252 = vst [vmem:[#allocation8] sm:$0xff] %v251_v0 }
 0x20c   :  { %454 = shalt.err (!%p451_p0)
}
 0x20d   :  { %s455_s9 = scalar_lea.hbm %s575_s4, 128 }
 0x20e   :  { %p456_p1 = scmp.ne.s32.totalorder %s575_s4, %s455_s9  ;;  %p459_p2 = scmp.lt.u32.totalorder %s455_s9, %s575_s4 }
 0x210   :  { %p461_p3 = pnand %p459_p2, %p456_p1 }
 0x212   :  { %464 = shalt.err (!%p461_p3)
}
 0x213   :  { %262 = dma.vmem_to_hbm [thread:$0]  %s260_s5, 128, %s575_s4, [#allocation4]  }
 0x214   :  { %469 = dma.done.wait [#allocation4], 128  }
 0x215   :  { %470 = vsyncadd [#allocation4], 4294967168 }
 0x216   :  { %266 = vsyncpa [#allocation3], 1 }
 0x217   :  { %267 = vsyncpa [#allocation6], 1 }
 0x218   :  { %268 = vsyncpa [#allocation4], 1 }

</bundles_post_ra>
